<compile_context>
chip_gen: v6e
topology: v6e:2x2x1
jax: 0.10.0
libtpu: 0.0.40
codegen_flags: <defaults>
</compile_context>

<pallas_src>
import math

import jax
import jax.numpy as jnp
from jax import lax
from jax.experimental import pallas as pl
from jax.experimental.pallas import tpu as pltpu

IGNORE_LABEL = 255
BD_LOGIT_THRESH = math.log(0.8 / 0.2)   # sigmoid(x) > 0.8  <=>  x > log(4)
BALANCE_WEIGHTS = (0.4, 1.0)            # config.LOSS.BALANCE_WEIGHTS
SB_WEIGHT = 0.5                         # config.LOSS.SB_WEIGHTS
BD_COEFF = 20.0                         # PIDNet BondaryLoss coeff_bce

MAX_TILE_PIXELS = 16384                 # lane-dim tile; ~12-13 MB of pipelined
                                        # buffers at C=19 -> fits v7x 64 MiB
VMEM_LIMIT_BYTES = 48 * 1024 * 1024     # safe on v7x (64 MiB), ample v5e/v6e

# Accumulator rows (per-lane partial sums, reduced over lanes in the wrapper).
(_R_CE0, _R_CE1, _R_ACC_COR, _R_ACC_VAL, _R_GCE_L, _R_GN_L,
 _R_CE3, _R_CE4, _R_VACC_COR, _R_VACC_VAL, _R_GCE_V, _R_GN_V,
 _R_POS, _R_NEG, _R_BCE_POS, _R_BCE_NEG) = range(16)
NUM_ACC = 16


# ---------------------------------------------------------------------------
# In-kernel helpers
# ---------------------------------------------------------------------------
def _ce_and_argmax(logits, label, row, want_argmax):
    """Per-pixel CE (-log softmax at label class) and optional first-argmax.

    logits: (C, TP) f32 — classes on sublanes, pixels on lanes.
    label : (1, TP) int32.   row: hoisted (C, TP) int32 sublane iota.
    """
    c = logits.shape[0]
    m = jnp.max(logits, axis=0, keepdims=True)
    lse = jnp.log(jnp.sum(jnp.exp(logits - m), axis=0, keepdims=True)) + m
    picked = jnp.sum(jnp.where(row == label, logits, 0.0), axis=0, keepdims=True)
    ce = lse - picked
    if not want_argmax:
        return ce, None
    # first index attaining the max (torch.argmax tie-breaking)
    idx = jnp.min(jnp.where(logits == m, row, c), axis=0, keepdims=True)
    return ce, idx


def _make_kernel(hw, tp, tiles_per_group, need_mask):
    """Kernel factory closing over static tiling constants."""

    def kernel(p0_ref, p1_ref, bd_ref, p3_ref, p4_ref,
               lvl_ref, vcf_ref, bdgt_ref, acc_ref):
        @pl.when(pl.program_id(2) == 0)
        def _():
            acc_ref[...] = jnp.zeros_like(acc_ref)

        f32 = jnp.float32
        p0 = p0_ref[0].astype(f32)          # (C_level, TP)
        p1 = p1_ref[0].astype(f32)
        p3 = p3_ref[0].astype(f32)          # (C_vcf, TP)
        p4 = p4_ref[0].astype(f32)
        xb = bd_ref[0].astype(f32)          # (1, TP) boundary logits
        lvl = lvl_ref[0]                    # (1, TP) int32
        vcf = vcf_ref[0]                    # (1, TP) int32
        tbd = bdgt_ref[0].astype(f32)       # (1, TP) boundary gt

        # Hoisted sublane iotas, shared by the two heads of each label.
        row_lvl = lax.broadcasted_iota(jnp.int32, p0.shape, 0)
        row_vcf = lax.broadcasted_iota(jnp.int32, p3.shape, 0)

        gate = xb > BD_LOGIT_THRESH         # == sigmoid(xb) > 0.8

        # ---- level branch ---------------------------------------------------
        ce0, _ = _ce_and_argmax(p0, lvl, row_lvl, want_argmax=False)
        ce1, idx1 = _ce_and_argmax(p1, lvl, row_lvl, want_argmax=True)
        lvl_valid = lvl >= 0
        g_lvl = (gate & (lvl != IGNORE_LABEL)).astype(f32)

        # ---- vcf branch -------------------------------------------------------
        ce3, idx3 = _ce_and_argmax(p3, vcf, row_vcf, want_argmax=True)
        ce4, _ = _ce_and_argmax(p4, vcf, row_vcf, want_argmax=False)
        vcf_valid = vcf >= 0
        g_vcf = (gate & (vcf != IGNORE_LABEL)).astype(f32)

        # ---- boundary BCE (class-balanced; weights applied in the wrapper) ---
        pos = (tbd == 1.0).astype(f32)
        neg = (tbd == 0.0).astype(f32)
        bce = jnp.maximum(xb, 0.0) - xb * tbd + jnp.log1p(jnp.exp(-jnp.abs(xb)))

        # Single dense accumulator update (order matches the _R_* constants).
        partials = [
            ce0,                                        # _R_CE0
            ce1,                                        # _R_CE1
            (lvl_valid & (idx1 == lvl)).astype(f32),    # _R_ACC_COR
            lvl_valid.astype(f32),                      # _R_ACC_VAL
            ce1 * g_lvl,                                # _R_GCE_L
            g_lvl,                                      # _R_GN_L
            ce3,                                        # _R_CE3
            ce4,                                        # _R_CE4
            (vcf_valid & (idx3 == vcf)).astype(f32),    # _R_VACC_COR
            vcf_valid.astype(f32),                      # _R_VACC_VAL
            ce4 * g_vcf,                                # _R_GCE_V
            g_vcf,                                      # _R_GN_V
            pos,                                        # _R_POS
            neg,                                        # _R_NEG
            bce * pos,                                  # _R_BCE_POS
            bce * neg,                                  # _R_BCE_NEG
        ]
        stacked = jnp.concatenate(partials, axis=0)     # (NUM_ACC, TP)

        if need_mask:
            # Remainder tile: zero out contributions from padded pixels.
            base = (pl.program_id(1) * tiles_per_group + pl.program_id(2)) * tp
            lane = lax.broadcasted_iota(jnp.int32, (1, tp), 1)
            valid_px = ((base + lane) < hw).astype(f32)
            stacked = stacked * valid_px

        acc_ref[...] += stacked

    return kernel


# ---------------------------------------------------------------------------
# Tiling helper
# ---------------------------------------------------------------------------
def _pick_tiling(hw, max_tp=MAX_TILE_PIXELS):
    """Returns (tile_pixels, padded_hw, need_mask)."""
    if hw <= max_tp:
        return hw, hw, False                       # full-row block, no padding
    top = max_tp - (max_tp % 128)
    for cand in range(top, 0, -128):               # largest divisor that is a
        if hw % cand == 0:                         # multiple of 128
            return cand, hw, False
    tp = top                                       # no divisor: pad + mask
    hw_pad = ((hw + tp - 1) // tp) * tp
    return tp, hw_pad, True


# ---------------------------------------------------------------------------
# Wrapper
# ---------------------------------------------------------------------------
def custom_loss_forward(pred, level_label, vcf_label, bd_gt):
    """pred = [level_aux, level_main, boundary(1ch), vcf_aux, vcf_main] (NCHW)."""
    n, c_level, h, w = pred[1].shape
    c_vcf = pred[-1].shape[1]
    hw = h * w
    # TODO(synk): F.interpolate(bilinear) resize branch not implemented; this
    # setup requires prediction and label spatial sizes to be equal.
    assert (pred[0].shape[2], pred[0].shape[3]) == (h, w)

    tp, hw_pad, need_mask = _pick_tiling(hw)
    num_tiles = hw_pad // tp
    # Split the tile axis into 2 megacore-parallel groups when possible so the
    # second TensorCore on v7x is busy even for N == 1 / odd N.
    ng = 2 if (num_tiles % 2 == 0 and num_tiles >= 2) else 1
    tiles_per_group = num_tiles // ng

    # Flatten spatial dims only — classes stay on the sublane axis, pixels land
    # on lanes, so no HBM transpose is needed. Keep prediction dtype (bf16 OK).
    p0 = pred[0].reshape(n, c_level, hw)
    p1 = pred[1].reshape(n, c_level, hw)
    bd = pred[2].reshape(n, 1, hw)
    p3 = pred[3].reshape(n, c_vcf, hw)
    p4 = pred[4].reshape(n, c_vcf, hw)
    lvl = level_label.reshape(n, 1, hw).astype(jnp.int32)
    vcf = vcf_label.reshape(n, 1, hw).astype(jnp.int32)
    bdg = bd_gt.reshape(n, 1, hw).astype(jnp.float32)

    if hw_pad != hw:
        padc = [(0, 0), (0, 0), (0, hw_pad - hw)]
        p0, p1, bd, p3, p4, lvl, vcf, bdg = (
            jnp.pad(a, padc) for a in (p0, p1, bd, p3, p4, lvl, vcf, bdg))

    def in_spec(c):
        return pl.BlockSpec(
            (1, c, tp), lambda b, g, t: (b, 0, g * tiles_per_group + t))

    kernel = _make_kernel(hw, tp, tiles_per_group, need_mask)

    acc = pl.pallas_call(
        kernel,
        out_shape=jax.ShapeDtypeStruct((n * ng * NUM_ACC, tp), jnp.float32),
        grid_spec=pltpu.PrefetchScalarGridSpec(
            num_scalar_prefetch=0,
            grid=(n, ng, tiles_per_group),
            in_specs=[in_spec(c_level), in_spec(c_level), in_spec(1),
                      in_spec(c_vcf), in_spec(c_vcf),
                      in_spec(1), in_spec(1), in_spec(1)],
            out_specs=pl.BlockSpec((NUM_ACC, tp),
                                   lambda b, g, t: (b * ng + g, 0)),
        ),
        compiler_params=pltpu.CompilerParams(
            dimension_semantics=("parallel", "parallel", "arbitrary"),
            vmem_limit_bytes=VMEM_LIMIT_BYTES,
        ),
    )(p0, p1, bd, p3, p4, lvl, vcf, bdg)

    # Tiny final reduction over (batch x group) partials and lanes.
    sums = jnp.sum(acc.reshape(n * ng, NUM_ACC, tp), axis=(0, 2))
    pix = jnp.float32(n * hw)

    loss_s = (BALANCE_WEIGHTS[0] * sums[_R_CE0]
              + BALANCE_WEIGHTS[1] * sums[_R_CE1]) / pix
    acc_v = sums[_R_ACC_COR] / (sums[_R_ACC_VAL] + 1e-10)
    # TODO(synk): torch returns NaN when every pixel is boundary-gated out; we clamp the denom.
    loss_sb = SB_WEIGHT * sums[_R_GCE_L] / jnp.maximum(sums[_R_GN_L], 1.0)

    loss_s_vcf = (BALANCE_WEIGHTS[0] * sums[_R_CE3]
                  + BALANCE_WEIGHTS[1] * sums[_R_CE4]) / pix
    vcf_acc = sums[_R_VACC_COR] / (sums[_R_VACC_VAL] + 1e-10)
    loss_sb_vcf = SB_WEIGHT * sums[_R_GCE_V] / jnp.maximum(sums[_R_GN_V], 1.0)

    tot = sums[_R_POS] + sums[_R_NEG]
    loss_b = BD_COEFF * (sums[_R_NEG] / tot * sums[_R_BCE_POS]
                         + sums[_R_POS] / tot * sums[_R_BCE_NEG]) / pix

    loss = loss_s + loss_b + loss_sb + loss_s_vcf + loss_sb_vcf
    return (loss[None],
            [pred[1], pred[-1]],
            acc_v,
            [loss_s, loss_b, loss_s_vcf],
            vcf_acc)


# ---------------------------------------------------------------------------
# Pure-JAX reference (same semantics) for a correctness check
# ---------------------------------------------------------------------------
def _ref_forward(pred, level_label, vcf_label, bd_gt):
    n, c_level, h, w = pred[1].shape
    pix = float(n * h * w)

    def to_pc(x):
        c = x.shape[1]
        return jnp.transpose(x, (0, 2, 3, 1)).reshape(-1, c).astype(jnp.float32)

    def ce_pp(logits_pc, lbl):
        logp = jax.nn.log_softmax(logits_pc, axis=-1)
        return -jnp.take_along_axis(logp, lbl[:, None], axis=-1)[:, 0]

    p0, p1, p3, p4 = map(to_pc, (pred[0], pred[1], pred[3], pred[4]))
    xb = to_pc(pred[2])[:, 0]
    lvl = level_label.reshape(-1).astype(jnp.int32)
    vcf = vcf_label.reshape(-1).astype(jnp.int32)
    tbd = bd_gt.reshape(-1).astype(jnp.float32)

    ce0, ce1 = ce_pp(p0, lvl), ce_pp(p1, lvl)
    ce3, ce4 = ce_pp(p3, vcf), ce_pp(p4, vcf)
    loss_s = (0.4 * jnp.sum(ce0) + 1.0 * jnp.sum(ce1)) / pix
    loss_s_vcf = (0.4 * jnp.sum(ce3) + 1.0 * jnp.sum(ce4)) / pix

    gate = jax.nn.sigmoid(xb) > 0.8
    g_l = (gate & (lvl != IGNORE_LABEL)).astype(jnp.float32)
    g_v = (gate & (vcf != IGNORE_LABEL)).astype(jnp.float32)
    loss_sb = 0.5 * jnp.sum(ce1 * g_l) / jnp.maximum(jnp.sum(g_l), 1.0)
    loss_sb_vcf = 0.5 * jnp.sum(ce4 * g_v) / jnp.maximum(jnp.sum(g_v), 1.0)

    pos = (tbd == 1.0).astype(jnp.float32)
    neg = (tbd == 0.0).astype(jnp.float32)
    tot = jnp.sum(pos) + jnp.sum(neg)
    wgt = pos * (jnp.sum(neg) / tot) + neg * (jnp.sum(pos) / tot)
    bce = jnp.maximum(xb, 0.0) - xb * tbd + jnp.log1p(jnp.exp(-jnp.abs(xb)))
    loss_b = 20.0 * jnp.sum(wgt * bce) / pix

    def pix_acc(logits_pc, lbl):
        idx = jnp.argmax(logits_pc, axis=-1).astype(jnp.int32)
        valid = lbl >= 0
        return (jnp.sum((valid & (idx == lbl)).astype(jnp.float32))
                / (jnp.sum(valid.astype(jnp.float32)) + 1e-10))

    acc = pix_acc(p1, lvl)
    vcf_acc = pix_acc(p3, vcf)
    loss = loss_s + loss_b + loss_sb + loss_s_vcf + loss_sb_vcf
    return loss, acc, vcf_acc, (loss_s, loss_b, loss_s_vcf)


if __name__ == "__main__":
    key = jax.random.PRNGKey(0)
    N, H, W = 2, 16, 16
    C_LEVEL, C_VCF = 4, 3
    ks = jax.random.split(key, 8)

    pred = [
        jax.random.normal(ks[0], (N, C_LEVEL, H, W), jnp.float32),  # level aux
        jax.random.normal(ks[1], (N, C_LEVEL, H, W), jnp.float32),  # level main
        jax.random.normal(ks[2], (N, 1, H, W), jnp.float32),        # boundary head
        jax.random.normal(ks[3], (N, C_VCF, H, W), jnp.float32),    # vcf aux
        jax.random.normal(ks[4], (N, C_VCF, H, W), jnp.float32),    # vcf main
    ]
    level_label = jax.random.randint(ks[5], (N, H, W), 0, C_LEVEL, jnp.int32)
    vcf_label = jax.random.randint(ks[6], (N, H, W), 0, C_VCF, jnp.int32)
    bd_gt = jax.random.bernoulli(ks[7], 0.3, (N, H, W)).astype(jnp.float32)

    out = custom_loss_forward(pred, level_label, vcf_label, bd_gt)
    out = jax.block_until_ready(out)

    total_loss, _, acc, losses, vcf_acc = out
    assert total_loss.shape == (1,)
    assert bool(jnp.isfinite(total_loss).all())

    ref_loss, ref_acc, ref_vacc, ref_parts = _ref_forward(
        pred, level_label, vcf_label, bd_gt)
    assert bool(jnp.allclose(total_loss[0], ref_loss, rtol=2e-3, atol=2e-3))
    assert bool(jnp.allclose(acc, ref_acc, rtol=1e-4, atol=1e-4))
    assert bool(jnp.allclose(vcf_acc, ref_vacc, rtol=1e-4, atol=1e-4))
    for got, want in zip(losses, ref_parts):
        assert bool(jnp.allclose(got, want, rtol=2e-3, atol=2e-3))

    print("KERNEL_OK")
</pallas_src>

<mosaic_0001>
module attributes {stable_mosaic.version = 11 : i64} {
  func.func @kernel(%arg0: i32, %arg1: i32, %arg2: i32, %arg3: memref<1x4x256xf32, #tpu.memory_space<vmem>>, %arg4: memref<1x4x256xf32, #tpu.memory_space<vmem>>, %arg5: memref<1x1x256xf32, #tpu.memory_space<vmem>>, %arg6: memref<1x3x256xf32, #tpu.memory_space<vmem>>, %arg7: memref<1x3x256xf32, #tpu.memory_space<vmem>>, %arg8: memref<1x1x256xi32, #tpu.memory_space<vmem>>, %arg9: memref<1x1x256xi32, #tpu.memory_space<vmem>>, %arg10: memref<1x1x256xf32, #tpu.memory_space<vmem>>, %arg11: memref<16x256xf32, #tpu.memory_space<vmem>>) attributes {dimension_semantics = [#tpu.dimension_semantics<parallel>, #tpu.dimension_semantics<parallel>, #tpu.dimension_semantics<arbitrary>], iteration_bounds = array<i64: 2, 1, 1>, scalar_prefetch = 0 : i64, scratch_operands = 0 : i64, tpu.core_type = #tpu.core_type<tc>, window_params = [{transform_indices = @transform_0, window_bounds = array<i64: 1, 4, 256>}, {transform_indices = @transform_1, window_bounds = array<i64: 1, 4, 256>}, {transform_indices = @transform_2, window_bounds = array<i64: 1, 1, 256>}, {transform_indices = @transform_3, window_bounds = array<i64: 1, 3, 256>}, {transform_indices = @transform_4, window_bounds = array<i64: 1, 3, 256>}, {transform_indices = @transform_5, window_bounds = array<i64: 1, 1, 256>}, {transform_indices = @transform_6, window_bounds = array<i64: 1, 1, 256>}, {transform_indices = @transform_7, window_bounds = array<i64: 1, 1, 256>}, {transform_indices = @transform_8, window_bounds = array<i64: 16, 256>}]} {
    %c0_i32 = arith.constant 0 : i32
    %0 = arith.cmpi eq, %arg2, %c0_i32 : i32
    %1 = arith.extui %0 : i1 to i32
    %c0_i32_0 = arith.constant 0 : i32
    %2 = arith.cmpi ne, %1, %c0_i32_0 : i32
    scf.if %2 {
      %cst_53 = arith.constant 0.000000e+00 : f32
      %151 = vector.broadcast %cst_53 : f32 to vector<16x256xf32>
      %c0_54 = arith.constant 0 : index
      %c0_55 = arith.constant 0 : index
      %152 = vector.load %arg11[%c0_54, %c0_55] : memref<16x256xf32, #tpu.memory_space<vmem>>, vector<16x256xf32>
      tpu.vector_store %arg11[%c0_54, %c0_55], %151 {strides = array<i32>} : memref<16x256xf32, #tpu.memory_space<vmem>>, vector<16x256xf32>,
    } else {
    }
    %c0 = arith.constant 0 : index
    %c0_1 = arith.constant 0 : index
    %c0_2 = arith.constant 0 : index
    %3 = vector.load %arg3[%c0, %c0_1, %c0_2] : memref<1x4x256xf32, #tpu.memory_space<vmem>>, vector<1x4x256xf32>
    %4 = vector.shape_cast %3 : vector<1x4x256xf32> to vector<4x256xf32>
    %c0_3 = arith.constant 0 : index
    %c0_4 = arith.constant 0 : index
    %c0_5 = arith.constant 0 : index
    %5 = vector.load %arg4[%c0_3, %c0_4, %c0_5] : memref<1x4x256xf32, #tpu.memory_space<vmem>>, vector<1x4x256xf32>
    %6 = vector.shape_cast %5 : vector<1x4x256xf32> to vector<4x256xf32>
    %c0_6 = arith.constant 0 : index
    %c0_7 = arith.constant 0 : index
    %c0_8 = arith.constant 0 : index
    %7 = vector.load %arg6[%c0_6, %c0_7, %c0_8] : memref<1x3x256xf32, #tpu.memory_space<vmem>>, vector<1x3x256xf32>
    %8 = vector.shape_cast %7 : vector<1x3x256xf32> to vector<3x256xf32>
    %c0_9 = arith.constant 0 : index
    %c0_10 = arith.constant 0 : index
    %c0_11 = arith.constant 0 : index
    %9 = vector.load %arg7[%c0_9, %c0_10, %c0_11] : memref<1x3x256xf32, #tpu.memory_space<vmem>>, vector<1x3x256xf32>
    %10 = vector.shape_cast %9 : vector<1x3x256xf32> to vector<3x256xf32>
    %c0_12 = arith.constant 0 : index
    %c0_13 = arith.constant 0 : index
    %c0_14 = arith.constant 0 : index
    %11 = vector.load %arg5[%c0_12, %c0_13, %c0_14] : memref<1x1x256xf32, #tpu.memory_space<vmem>>, vector<1x1x256xf32>
    %12 = vector.shape_cast %11 : vector<1x1x256xf32> to vector<1x256xf32>
    %c0_15 = arith.constant 0 : index
    %c0_16 = arith.constant 0 : index
    %c0_17 = arith.constant 0 : index
    %13 = vector.load %arg8[%c0_15, %c0_16, %c0_17] : memref<1x1x256xi32, #tpu.memory_space<vmem>>, vector<1x1x256xi32>
    %14 = vector.shape_cast %13 : vector<1x1x256xi32> to vector<1x256xi32>
    %c0_18 = arith.constant 0 : index
    %c0_19 = arith.constant 0 : index
    %c0_20 = arith.constant 0 : index
    %15 = vector.load %arg9[%c0_18, %c0_19, %c0_20] : memref<1x1x256xi32, #tpu.memory_space<vmem>>, vector<1x1x256xi32>
    %16 = vector.shape_cast %15 : vector<1x1x256xi32> to vector<1x256xi32>
    %c0_21 = arith.constant 0 : index
    %c0_22 = arith.constant 0 : index
    %c0_23 = arith.constant 0 : index
    %17 = vector.load %arg10[%c0_21, %c0_22, %c0_23] : memref<1x1x256xf32, #tpu.memory_space<vmem>>, vector<1x1x256xf32>
    %18 = vector.shape_cast %17 : vector<1x1x256xf32> to vector<1x256xf32>
    %19 = tpu.iota {dimensions = array<i32: 0>} : vector<4x256xi32>
    %20 = tpu.iota {dimensions = array<i32: 0>} : vector<3x256xi32>
    %cst = arith.constant 1.38629436 : f32
    %21 = vector.broadcast %cst : f32 to vector<1x256xf32>
    %22 = arith.cmpf ogt, %12, %21 : vector<1x256xf32>
    %cst_24 = arith.constant dense<0xFF800000> : vector<256xf32>
    %23 = vector.multi_reduction <maximumf>, %4, %cst_24 [0] : vector<4x256xf32> to vector<256xf32>
    %24 = vector.shape_cast %23 : vector<256xf32> to vector<1x256xf32>
    %25 = vector.broadcast %24 : vector<1x256xf32> to vector<4x256xf32>
    %26 = arith.subf %4, %25 : vector<4x256xf32>
    %27 = math.exp %26 : vector<4x256xf32>
    %cst_25 = arith.constant dense<0.000000e+00> : vector<256xf32>
    %28 = vector.multi_reduction <add>, %27, %cst_25 [0] : vector<4x256xf32> to vector<256xf32>
    %29 = vector.shape_cast %28 : vector<256xf32> to vector<1x256xf32>
    %30 = math.log %29 : vector<1x256xf32>
    %31 = arith.addf %30, %24 : vector<1x256xf32>
    %32 = vector.broadcast %14 : vector<1x256xi32> to vector<4x256xi32>
    %33 = arith.cmpi eq, %19, %32 : vector<4x256xi32>
    %cst_26 = arith.constant 0.000000e+00 : f32
    %34 = vector.broadcast %cst_26 : f32 to vector<4x256xf32>
    %35 = arith.select %33, %4, %34 : vector<4x256xi1>, vector<4x256xf32>
    %cst_27 = arith.constant dense<0.000000e+00> : vector<256xf32>
    %36 = vector.multi_reduction <add>, %35, %cst_27 [0] : vector<4x256xf32> to vector<256xf32>
    %37 = vector.shape_cast %36 : vector<256xf32> to vector<1x256xf32>
    %38 = arith.subf %31, %37 : vector<1x256xf32>
    %cst_28 = arith.constant dense<0xFF800000> : vector<256xf32>
    %39 = vector.multi_reduction <maximumf>, %6, %cst_28 [0] : vector<4x256xf32> to vector<256xf32>
    %40 = vector.shape_cast %39 : vector<256xf32> to vector<1x256xf32>
    %41 = vector.broadcast %40 : vector<1x256xf32> to vector<4x256xf32>
    %42 = arith.subf %6, %41 : vector<4x256xf32>
    %43 = math.exp %42 : vector<4x256xf32>
    %cst_29 = arith.constant dense<0.000000e+00> : vector<256xf32>
    %44 = vector.multi_reduction <add>, %43, %cst_29 [0] : vector<4x256xf32> to vector<256xf32>
    %45 = vector.shape_cast %44 : vector<256xf32> to vector<1x256xf32>
    %46 = math.log %45 : vector<1x256xf32>
    %47 = arith.addf %46, %40 : vector<1x256xf32>
    %48 = vector.broadcast %14 : vector<1x256xi32> to vector<4x256xi32>
    %49 = arith.cmpi eq, %19, %48 : vector<4x256xi32>
    %cst_30 = arith.constant 0.000000e+00 : f32
    %50 = vector.broadcast %cst_30 : f32 to vector<4x256xf32>
    %51 = arith.select %49, %6, %50 : vector<4x256xi1>, vector<4x256xf32>
    %cst_31 = arith.constant dense<0.000000e+00> : vector<256xf32>
    %52 = vector.multi_reduction <add>, %51, %cst_31 [0] : vector<4x256xf32> to vector<256xf32>
    %53 = vector.shape_cast %52 : vector<256xf32> to vector<1x256xf32>
    %54 = arith.subf %47, %53 : vector<1x256xf32>
    %55 = vector.broadcast %40 : vector<1x256xf32> to vector<4x256xf32>
    %56 = arith.cmpf oeq, %6, %55 : vector<4x256xf32>
    %c4_i32 = arith.constant 4 : i32
    %57 = vector.broadcast %c4_i32 : i32 to vector<4x256xi32>
    %58 = arith.select %56, %19, %57 : vector<4x256xi1>, vector<4x256xi32>
    %cst_32 = arith.constant dense<2147483647> : vector<256xi32>
    %59 = vector.multi_reduction <minsi>, %58, %cst_32 [0] : vector<4x256xi32> to vector<256xi32>
    %60 = vector.shape_cast %59 : vector<256xi32> to vector<1x256xi32>
    %c0_i32_33 = arith.constant 0 : i32
    %61 = vector.broadcast %c0_i32_33 : i32 to vector<1x256xi32>
    %62 = arith.cmpi sge, %14, %61 : vector<1x256xi32>
    %c255_i32 = arith.constant 255 : i32
    %63 = vector.broadcast %c255_i32 : i32 to vector<1x256xi32>
    %64 = arith.cmpi ne, %14, %63 : vector<1x256xi32>
    %65 = arith.andi %22, %64 : vector<1x256xi1>
    %66 = arith.extui %65 : vector<1x256xi1> to vector<1x256xi32>
    %67 = arith.sitofp %66 : vector<1x256xi32> to vector<1x256xf32>
    %cst_34 = arith.constant dense<0xFF800000> : vector<256xf32>
    %68 = vector.multi_reduction <maximumf>, %8, %cst_34 [0] : vector<3x256xf32> to vector<256xf32>
    %69 = vector.shape_cast %68 : vector<256xf32> to vector<1x256xf32>
    %70 = vector.broadcast %69 : vector<1x256xf32> to vector<3x256xf32>
    %71 = arith.subf %8, %70 : vector<3x256xf32>
    %72 = math.exp %71 : vector<3x256xf32>
    %cst_35 = arith.constant dense<0.000000e+00> : vector<256xf32>
    %73 = vector.multi_reduction <add>, %72, %cst_35 [0] : vector<3x256xf32> to vector<256xf32>
    %74 = vector.shape_cast %73 : vector<256xf32> to vector<1x256xf32>
    %75 = math.log %74 : vector<1x256xf32>
    %76 = arith.addf %75, %69 : vector<1x256xf32>
    %77 = vector.broadcast %16 : vector<1x256xi32> to vector<3x256xi32>
    %78 = arith.cmpi eq, %20, %77 : vector<3x256xi32>
    %cst_36 = arith.constant 0.000000e+00 : f32
    %79 = vector.broadcast %cst_36 : f32 to vector<3x256xf32>
    %80 = arith.select %78, %8, %79 : vector<3x256xi1>, vector<3x256xf32>
    %cst_37 = arith.constant dense<0.000000e+00> : vector<256xf32>
    %81 = vector.multi_reduction <add>, %80, %cst_37 [0] : vector<3x256xf32> to vector<256xf32>
    %82 = vector.shape_cast %81 : vector<256xf32> to vector<1x256xf32>
    %83 = arith.subf %76, %82 : vector<1x256xf32>
    %84 = vector.broadcast %69 : vector<1x256xf32> to vector<3x256xf32>
    %85 = arith.cmpf oeq, %8, %84 : vector<3x256xf32>
    %c3_i32 = arith.constant 3 : i32
    %86 = vector.broadcast %c3_i32 : i32 to vector<3x256xi32>
    %87 = arith.select %85, %20, %86 : vector<3x256xi1>, vector<3x256xi32>
    %cst_38 = arith.constant dense<2147483647> : vector<256xi32>
    %88 = vector.multi_reduction <minsi>, %87, %cst_38 [0] : vector<3x256xi32> to vector<256xi32>
    %89 = vector.shape_cast %88 : vector<256xi32> to vector<1x256xi32>
    %cst_39 = arith.constant dense<0xFF800000> : vector<256xf32>
    %90 = vector.multi_reduction <maximumf>, %10, %cst_39 [0] : vector<3x256xf32> to vector<256xf32>
    %91 = vector.shape_cast %90 : vector<256xf32> to vector<1x256xf32>
    %92 = vector.broadcast %91 : vector<1x256xf32> to vector<3x256xf32>
    %93 = arith.subf %10, %92 : vector<3x256xf32>
    %94 = math.exp %93 : vector<3x256xf32>
    %cst_40 = arith.constant dense<0.000000e+00> : vector<256xf32>
    %95 = vector.multi_reduction <add>, %94, %cst_40 [0] : vector<3x256xf32> to vector<256xf32>
    %96 = vector.shape_cast %95 : vector<256xf32> to vector<1x256xf32>
    %97 = math.log %96 : vector<1x256xf32>
    %98 = arith.addf %97, %91 : vector<1x256xf32>
    %99 = vector.broadcast %16 : vector<1x256xi32> to vector<3x256xi32>
    %100 = arith.cmpi eq, %20, %99 : vector<3x256xi32>
    %cst_41 = arith.constant 0.000000e+00 : f32
    %101 = vector.broadcast %cst_41 : f32 to vector<3x256xf32>
    %102 = arith.select %100, %10, %101 : vector<3x256xi1>, vector<3x256xf32>
    %cst_42 = arith.constant dense<0.000000e+00> : vector<256xf32>
    %103 = vector.multi_reduction <add>, %102, %cst_42 [0] : vector<3x256xf32> to vector<256xf32>
    %104 = vector.shape_cast %103 : vector<256xf32> to vector<1x256xf32>
    %105 = arith.subf %98, %104 : vector<1x256xf32>
    %c0_i32_43 = arith.constant 0 : i32
    %106 = vector.broadcast %c0_i32_43 : i32 to vector<1x256xi32>
    %107 = arith.cmpi sge, %16, %106 : vector<1x256xi32>
    %c255_i32_44 = arith.constant 255 : i32
    %108 = vector.broadcast %c255_i32_44 : i32 to vector<1x256xi32>
    %109 = arith.cmpi ne, %16, %108 : vector<1x256xi32>
    %110 = arith.andi %22, %109 : vector<1x256xi1>
    %111 = arith.extui %110 : vector<1x256xi1> to vector<1x256xi32>
    %112 = arith.sitofp %111 : vector<1x256xi32> to vector<1x256xf32>
    %cst_45 = arith.constant 1.000000e+00 : f32
    %113 = vector.broadcast %cst_45 : f32 to vector<1x256xf32>
    %114 = arith.cmpf oeq, %18, %113 : vector<1x256xf32>
    %115 = arith.extui %114 : vector<1x256xi1> to vector<1x256xi32>
    %116 = arith.sitofp %115 : vector<1x256xi32> to vector<1x256xf32>
    %cst_46 = arith.constant 0.000000e+00 : f32
    %117 = vector.broadcast %cst_46 : f32 to vector<1x256xf32>
    %118 = arith.cmpf oeq, %18, %117 : vector<1x256xf32>
    %119 = arith.extui %118 : vector<1x256xi1> to vector<1x256xi32>
    %120 = arith.sitofp %119 : vector<1x256xi32> to vector<1x256xf32>
    %cst_47 = arith.constant 0.000000e+00 : f32
    %121 = vector.broadcast %cst_47 : f32 to vector<1x256xf32>
    %122 = arith.maximumf %12, %121 : vector<1x256xf32>
    %123 = arith.mulf %12, %18 : vector<1x256xf32>
    %124 = arith.subf %122, %123 : vector<1x256xf32>
    %125 = math.absf %12 : vector<1x256xf32>
    %cst_48 = arith.constant 0.000000e+00 : f32
    %126 = vector.broadcast %cst_48 : f32 to vector<1x256xf32>
    %127 = arith.subf %126, %125 : vector<1x256xf32>
    %128 = math.exp %127 : vector<1x256xf32>
    %129 = math.log1p %128 : vector<1x256xf32>
    %130 = arith.addf %124, %129 : vector<1x256xf32>
    %131 = arith.cmpi eq, %60, %14 : vector<1x256xi32>
    %132 = arith.andi %62, %131 : vector<1x256xi1>
    %133 = arith.extui %132 : vector<1x256xi1> to vector<1x256xi32>
    %134 = arith.sitofp %133 : vector<1x256xi32> to vector<1x256xf32>
    %135 = arith.extui %62 : vector<1x256xi1> to vector<1x256xi32>
    %136 = arith.sitofp %135 : vector<1x256xi32> to vector<1x256xf32>
    %137 = arith.mulf %54, %67 : vector<1x256xf32>
    %138 = arith.cmpi eq, %89, %16 : vector<1x256xi32>
    %139 = arith.andi %107, %138 : vector<1x256xi1>
    %140 = arith.extui %139 : vector<1x256xi1> to vector<1x256xi32>
    %141 = arith.sitofp %140 : vector<1x256xi32> to vector<1x256xf32>
    %142 = arith.extui %107 : vector<1x256xi1> to vector<1x256xi32>
    %143 = arith.sitofp %142 : vector<1x256xi32> to vector<1x256xf32>
    %144 = arith.mulf %105, %112 : vector<1x256xf32>
    %145 = arith.mulf %130, %116 : vector<1x256xf32>
    %146 = arith.mulf %130, %120 : vector<1x256xf32>
    %147 = tpu.concatenate %38, %54, %134, %136, %137, %67, %83, %105, %141, %143, %144, %112, %116, %120, %145, %146 in 0 : vector<1x256xf32>, vector<1x256xf32>, vector<1x256xf32>, vector<1x256xf32>, vector<1x256xf32>, vector<1x256xf32>, vector<1x256xf32>, vector<1x256xf32>, vector<1x256xf32>, vector<1x256xf32>, vector<1x256xf32>, vector<1x256xf32>, vector<1x256xf32>, vector<1x256xf32>, vector<1x256xf32>, vector<1x256xf32> -> vector<16x256xf32>
    %c0_49 = arith.constant 0 : index
    %c0_50 = arith.constant 0 : index
    %148 = vector.load %arg11[%c0_49, %c0_50] : memref<16x256xf32, #tpu.memory_space<vmem>>, vector<16x256xf32>
    %149 = arith.addf %148, %147 : vector<16x256xf32>
    %c0_51 = arith.constant 0 : index
    %c0_52 = arith.constant 0 : index
    %150 = vector.load %arg11[%c0_51, %c0_52] : memref<16x256xf32, #tpu.memory_space<vmem>>, vector<16x256xf32>
    tpu.vector_store %arg11[%c0_51, %c0_52], %149 {strides = array<i32>} : memref<16x256xf32, #tpu.memory_space<vmem>>, vector<16x256xf32>,
    return
  }
  func.func @transform_0(%arg0: i32, %arg1: i32, %arg2: i32) -> (i32, i32, i32) {
    %c1_i32 = arith.constant 1 : i32
    %0 = arith.muli %arg1, %c1_i32 : i32
    %1 = arith.addi %0, %arg2 : i32
    %c0_i32 = arith.constant 0 : i32
    %c0_i32_0 = arith.constant 0 : i32
    return %arg0, %c0_i32, %1 : i32, i32, i32
  }
  func.func @transform_1(%arg0: i32, %arg1: i32, %arg2: i32) -> (i32, i32, i32) {
    %c1_i32 = arith.constant 1 : i32
    %0 = arith.muli %arg1, %c1_i32 : i32
    %1 = arith.addi %0, %arg2 : i32
    %c0_i32 = arith.constant 0 : i32
    %c0_i32_0 = arith.constant 0 : i32
    return %arg0, %c0_i32, %1 : i32, i32, i32
  }
  func.func @transform_2(%arg0: i32, %arg1: i32, %arg2: i32) -> (i32, i32, i32) {
    %c1_i32 = arith.constant 1 : i32
    %0 = arith.muli %arg1, %c1_i32 : i32
    %1 = arith.addi %0, %arg2 : i32
    %c0_i32 = arith.constant 0 : i32
    %c0_i32_0 = arith.constant 0 : i32
    return %arg0, %c0_i32, %1 : i32, i32, i32
  }
  func.func @transform_3(%arg0: i32, %arg1: i32, %arg2: i32) -> (i32, i32, i32) {
    %c1_i32 = arith.constant 1 : i32
    %0 = arith.muli %arg1, %c1_i32 : i32
    %1 = arith.addi %0, %arg2 : i32
    %c0_i32 = arith.constant 0 : i32
    %c0_i32_0 = arith.constant 0 : i32
    return %arg0, %c0_i32, %1 : i32, i32, i32
  }
  func.func @transform_4(%arg0: i32, %arg1: i32, %arg2: i32) -> (i32, i32, i32) {
    %c1_i32 = arith.constant 1 : i32
    %0 = arith.muli %arg1, %c1_i32 : i32
    %1 = arith.addi %0, %arg2 : i32
    %c0_i32 = arith.constant 0 : i32
    %c0_i32_0 = arith.constant 0 : i32
    return %arg0, %c0_i32, %1 : i32, i32, i32
  }
  func.func @transform_5(%arg0: i32, %arg1: i32, %arg2: i32) -> (i32, i32, i32) {
    %c1_i32 = arith.constant 1 : i32
    %0 = arith.muli %arg1, %c1_i32 : i32
    %1 = arith.addi %0, %arg2 : i32
    %c0_i32 = arith.constant 0 : i32
    %c0_i32_0 = arith.constant 0 : i32
    return %arg0, %c0_i32, %1 : i32, i32, i32
  }
  func.func @transform_6(%arg0: i32, %arg1: i32, %arg2: i32) -> (i32, i32, i32) {
    %c1_i32 = arith.constant 1 : i32
    %0 = arith.muli %arg1, %c1_i32 : i32
    %1 = arith.addi %0, %arg2 : i32
    %c0_i32 = arith.constant 0 : i32
    %c0_i32_0 = arith.constant 0 : i32
    return %arg0, %c0_i32, %1 : i32, i32, i32
  }
  func.func @transform_7(%arg0: i32, %arg1: i32, %arg2: i32) -> (i32, i32, i32) {
    %c1_i32 = arith.constant 1 : i32
    %0 = arith.muli %arg1, %c1_i32 : i32
    %1 = arith.addi %0, %arg2 : i32
    %c0_i32 = arith.constant 0 : i32
    %c0_i32_0 = arith.constant 0 : i32
    return %arg0, %c0_i32, %1 : i32, i32, i32
  }
  func.func @transform_8(%arg0: i32, %arg1: i32, %arg2: i32) -> (i32, i32) {
    %c1_i32 = arith.constant 1 : i32
    %0 = arith.muli %arg0, %c1_i32 : i32
    %1 = arith.addi %0, %arg1 : i32
    %c0_i32 = arith.constant 0 : i32
    %c0_i32_0 = arith.constant 0 : i32
    return %1, %c0_i32 : i32, i32
  }
}

</mosaic_0001>

<bundles_post_ra>
// kernel: tpu_custom_call.1
= control target key start
LH: loop header
LB: loop body
LE: loop exit
PB: predicated region body
PF: predicated region fallthrough
CT: control target
= control target key end

     0   :  { %13 = vsyncpa [#allocation3], 0  ;;  %s2240_s0 = inlined_call_operand.vmem [shape: f32[2,4,256], index: 0, kind: input, shape index: {}]   ;;  %s2241_s1 = inlined_call_operand.vmem [shape: f32[2,4,256], index: 1, kind: input, shape index: {}]   ;;  %s2242_s2 = inlined_call_operand.vmem [shape: f32[2,1,256], index: 2, kind: input, shape index: {}]   ;;  %s2243_s3 = inlined_call_operand.vmem [shape: f32[2,3,256], index: 3, kind: input, shape index: {}]   ;;  %s2244_s4 = inlined_call_operand.vmem [shape: f32[2,3,256], index: 4, kind: input, shape index: {}]   ;;  %s2245_s5 = inlined_call_operand.vmem [shape: s32[2,1,256], index: 5, kind: input, shape index: {}]   ;;  %s2246_s6 = inlined_call_operand.vmem [shape: s32[2,1,256], index: 6, kind: input, shape index: {}]   ;;  %s2247_s7 = inlined_call_operand.vmem [shape: f32[2,1,256], index: 7, kind: input, shape index: {}]   ;;  %s2248_s8 = inlined_call_operand.hbm [shape: f32[32,256], index: 8, kind: output, shape index: {}]  }
   0x1   :  { %15 = vsyncpa [#allocation3 + $0x1], 0  ;;  %s1720_s27 = smov 0   ;;  %s1722_s28 = smov 0  }
   0x2   :  { %s1724_s29 = smov 0   ;;  %s1726_s30 = smov 0  }
   0x3   :  { %s1728_s9 = smov 0   ;;  %s1730_s10 = smov 0  }
   0x4 LB: > { %s1459_s11 = sadd.s32 4294967295, %s1666_s10   ;;  %s1460_s12 = sadd.s32 4294967294, %s1666_s10   ;;  %s1666_s10 = sphi %s1730_s10, %s21_s10   ;;  %s1662_s9 = sphi %s1728_s9, %s2268_s9   ;;  %s1658_s30 = sphi %s1726_s30, %s2267_s30   ;;  %s1654_s29 = sphi %s1724_s29, %s2266_s29   ;;  %s1650_s28 = sphi %s1722_s28, %s2265_s28   ;;  %s1646_s27 = sphi %s1720_s27, %s2264_s27  }
   0x5   : > { %s40_s13 = sadd.s32 1, %s1662_s9  ;;  %s289_s14 = sadd.s32 1, %s1654_s29 }
   0x6   : > { %p42_p0 = scmp.ge.s32.totalorder %s40_s13, 2  ;;  %p299_p1 = scmp.ne.s32.totalorder %s1654_s29, %s1650_s28 }
   0x7   : > { %p300_p2 = scmp.eq.s32.totalorder %s1459_s11, 1  ;;  %p305_p3 = scmp.ne.s32.totalorder %s1650_s28, %s1646_s27 }
   0x8   : > { %s2270_s13 = smov (%p42_p0, %s40_s13), 0  ;;  %p306_p5 = scmp.eq.s32.totalorder %s1460_s12, 1 }
   0x9   : > { %2250 = sst [smem:[#allocation5_spill]] %s2270_s13  ;;  %p1760_p4 = por %p300_p2, %p299_p1 }
   0xa   : > { %s286_s16 = ssub.s32 %s1662_s9, %s2270_s13  ;;  %p1463_p6 = scmp.ge.s32.totalorder %s1666_s10, 1 }
   0xb   : > { %p287_p7 = scmp.eq.s32.totalorder %s286_s16, 0  ;;  %p1767_p8 = por %p306_p5, %p305_p3 }
   0xc   : > { %p440_p9 = scmp.lt.s32.totalorder %s1666_s10, 3 }
   0xd   : > { %s1773_s18 = scalar_select %p287_p7, %s1654_s29, %s289_s14  }
   0xe   : > { %p441_p10 = pnand %p1463_p6, %p440_p9 }
   0xf   : > { %p547_p11 = scmp.lt.s32.totalorder (!%p441_p10), %s1658_s30, 1 }
  0x10   : > { %444 = sbr.rel (%p441_p10) target bundleno = 152 (0x98), region = 52 }
  0x15   : > { %s548_s19 = scalar_select %p547_p11, %s1658_s30, 1  ;;  %v655_v0 = vlaneseq  ;;  %vm661_vm0 = vcmask 1043456   ;;  %v1668_v9 = vmov 839922192   ;;  %vm837_vm1 = vcmask 1042432  }
  0x16   : > { %v801_v10 = vunpack.c.l.s4 %v1668_v9 }
  0x17   : > { %s1777_s20 = sshll.u32 %s548_s19, 3  ;;  %s1787_s11 = sshll.u32 %s548_s19, 1  ;;  %v1793_v3 = vshrl.u32 %v655_v0, 7 }
  0x18   : > { %s554_s23 = scalar_lea.vmem %s2240_s0, %s1777_s20  ;;  %s566_s26 = scalar_lea.vmem %s2241_s1, %s1777_s20  ;;  %v802_v23 = vunpack.c.0.s8 %v801_v10 }
  0x19   : > { %v1789_v1 = vld [vmem:[%s554_s23] sm:$0xff]  ;;  %s589_s16 = scalar_lea.vmem %s2243_s3, %s1777_s20  ;;  %s612_s22 = scalar_lea.vmem %s2245_s5, %s1787_s11  ;;  %v1820_v13 = vsub.s32 0, %v1793_v3 }
  0x1a   : > { %v1791_v2 = vld [vmem:[%s566_s26] sm:$0xff]  ;;  %v1805_v4 = vcombine.high %v1789_v1, %v1789_v1  ;;  %v662_v5 = vsel %vm661_vm0, %v1789_v1, -inf  ;;  %v805_v34 = vsub.s32 %v802_v23, %v1793_v3  ;;  %s623_s23 = scalar_lea.vmem %s2246_s6, %s1787_s11  ;;  %s601_s26 = scalar_lea.vmem %s2244_s4, %s1777_s20 }
  0x1b   : > { %v1811_v6 = vcombine.high %v1791_v2, %v1791_v2  ;;  %v737_v7 = vsel %vm661_vm0, %v1791_v2, -inf  ;;  %v1815_v8 = vld [vmem:[%s612_s22] sm:$0x3]  ;;  %v663_v11 = vrot.slane %v662_v5, 4  ;;  %s577_s14 = scalar_lea.vmem %s2242_s2, %s1787_s11  ;;  %s634_s13 = scalar_lea.vmem %s2247_s7, %s1787_s11 }
  0x1c   : > { %v669_v12 = vsel %vm661_vm0, %v1805_v4, -inf  ;;  %v1822_v14 = vld [vmem:[%s589_s16] sm:$0x77]  ;;  %v738_v16 = vrot.slane %v737_v7, 4  ;;  %v1828_v19 = vrot.slane %v1815_v8, %v1820_v13  ;;  %v1868_v57 = vrot.slane %v1793_v3, %v805_v34  ;;  %s542_s16 = sand.u32 1, %s1650_s28  }
  0x1d   : > { %v670_v15 = vrot.slane %v669_v12, 4  ;;  %v744_v17 = vsel %vm661_vm0, %v1811_v6, -inf  ;;  %v664_v18 = vmax.f32 %v662_v5, %v663_v11  ;;  %v1832_v26 = vcombine.high %v1822_v14, %v1822_v14  ;;  %v1853_v47 = vld [vmem:[%s623_s23] sm:$0x3]  ;;  %s1464_s11 = sshll.u32 %s542_s16, 5  ;;  %s1496_s23 = sshll.u32 %s1658_s30, 9 }
  0x1e   : > { %v745_v20 = vrot.slane %v744_v17, 4  ;;  %v739_v22 = vmax.f32 %v737_v7, %v738_v16  ;;  %vm714_vm2 = vcmp.eq.s32.totalorder %v1793_v3, %v1828_v19  ;;  %v838_v31 = vsel %vm837_vm1, %v1822_v14, -inf  ;;  %v1859_v50 = vld [vmem:[%s601_s26] sm:$0x77]  ;;  %s2146_s19 = scalar_lea.vmem [#allocation2], %s1464_s11  ;;  %s2188_s20 = scalar_lea.hbm %s2248_s8, %s1496_s23 }
  0x1f   : > { %v671_v21 = vmax.f32 %v669_v12, %v670_v15  ;;  %v665_v24 = vrot.slane %v664_v18, 2  ;;  %v839_v37 = vrot.slane %v838_v31, 4  ;;  %v845_v38 = vsel %vm837_vm1, %v1832_v26, -inf  ;;  %s1265_s24 = sshll.u32 %s2146_s19, 4  ;;  %s2195_s30 = scalar_lea.sflag [#allocation3], %s542_s16  ;;  %s2190_s24 = int_to_ptr.vmem [resolvable:$true] %s1265_s24 }
  0x20   : > { %v746_v25 = vmax.f32 %v744_v17, %v745_v20  ;;  %v740_v28 = vrot.slane %v739_v22, 2  ;;  %v716_v40 = vsel %vm714_vm2, %v1789_v1, 0.0  ;;  %v781_v42 = vsel %vm714_vm2, %v1791_v2, 0.0  ;;  %s1590_s12 = scalar_lea.vmem %s2190_s24, 512 }
  0x21   : > { %v672_v27 = vrot.slane %v671_v21, 2  ;;  %v666_v29 = vmax.f32 %v664_v18, %v665_v24  ;;  %v840_v45 = vmax.f32 %v838_v31, %v839_v37  ;;  %v846_v46 = vrot.slane %v845_v38, 4  ;;  %p1591_p12 = scmp.ne.s32.totalorder %s2190_s24, %s1590_s12 }
  0x22   : > { %v747_v30 = vrot.slane %v746_v25, 2  ;;  %v741_v33 = vmax.f32 %v739_v22, %v740_v28  ;;  %v718_v51 = vsel %vm661_vm0, %v716_v40, 0.0  ;;  %v783_v56 = vsel %vm661_vm0, %v781_v42, 0.0 }
  0x23   : > { %v673_v32 = vmax.f32 %v671_v21, %v672_v27  ;;  %v667_v35 = vrot.slane %v666_v29, 1  ;;  %v841_v53 = vrot.slane %v840_v45, 2  ;;  %v847_v54 = vmax.f32 %v845_v38, %v846_v46  ;;  %p1592_p13 = pnand %p1591_p12, %p1760_p4 }
  0x24   : > { %v748_v36 = vmax.f32 %v746_v25, %v747_v30  ;;  %v742_v41 = vrot.slane %v741_v33, 1  ;;  %v1874_v61 = vrot.slane %v1853_v47, %v1820_v13  ;;  %v719_v63 = vrot.slane %v718_v51, 4 }
  0x25   : > { %v674_v39 = vrot.slane %v673_v32, 1  ;;  %v1851_v43 = vmax.f32 %v666_v29, %v667_v35  ;;  %v842_v59 = vmax.f32 %v840_v45, %v841_v53  ;;  %v848_v60 = vrot.slane %v847_v54, 2  ;;  %p1593_p0 = pneg %p1592_p13 }
  0x26   : > { %v749_v44 = vrot.slane %v748_v36, 1  ;;  %v1857_v49 = vmax.f32 %v741_v33, %v742_v41  ;;  %v1879_v0 = vcombine.high %v1859_v50, %v1859_v50  ;;  %v1669_v5 = vmov 1966171168  }
  0x27   : > { %v1855_v48 = vmax.f32 %v673_v32, %v674_v39  ;;  %v1032_v7 = vunpack.c.l.s4 %v1669_v5  ;;  %v843_v10 = vrot.slane %v842_v59, 1  ;;  %v849_v11 = vmax.f32 %v847_v54, %v848_v60 }
  0x28   : > { %v1862_v52 = vmax.f32 %v748_v36, %v749_v44  ;;  %v784_v15 = vrot.slane %v783_v56, 4  ;;  %vm890_vm4 = vcmp.eq.s32.totalorder %v1793_v3, %v1874_v61  ;;  %v943_v25 = vsel %vm837_vm1, %v1879_v0, -inf }
  0x29   : > { %v678_v55 = vcombine.low %v1851_v43, %v1855_v48  ;;  %v1889_v22 = vmax.f32 %v842_v59, %v843_v10  ;;  %v892_v29 = vsel %vm890_vm4, %v1822_v14, 0.0  ;;  %v944_v32 = vrot.slane %v943_v25, 4 }
  0x2a   : > { %v753_v58 = vcombine.low %v1857_v49, %v1862_v52  ;;  %v1033_v33 = vunpack.c.0.s8 %v1032_v7  ;;  %v720_v34 = vadd.f32 %v719_v63, %v718_v51  ;;  %v894_v38 = vsel %vm837_vm1, %v892_v29, 0.0 }
  0x2b   : > { %v680_v62 = vsub.f32 %v1789_v1, %v678_v55  ;;  %v936_v1 = vsel %vm837_vm1, %v1859_v50, -inf  ;;  %v945_v40 = vmax.f32 %v943_v25, %v944_v32  ;;  %v785_v41 = vadd.f32 %v784_v15, %v783_v56 }
  0x2c   : > { %v755_v9 = vsub.f32 %v1791_v2, %v753_v58  ;;  %vm799_vm3 = vcmp.eq.f32.partialorder %v1791_v2, %v753_v58  ;;  %v850_v2 = vrot.slane %v849_v11, 1  ;;  %v937_v24 = vrot.slane %v936_v1, 4 }
  0x2d   : > { %v681_v12 = vmul.f32 1.442695, %v680_v62  ;;  %v807_v16 = vsel %vm799_vm3, %v1868_v57, 4  ;;  %v946_v51 = vrot.slane %v945_v40, 2  ;;  %v721_v53 = vrot.slane %v720_v34, 2 }
  0x2e   : > { %v756_v17 = vmul.f32 1.442695, %v755_v9  ;;  %v808_v18 = vcombine.high %v807_v16, %v807_v16  ;;  %v809_v20 = vsel %vm661_vm0, %v807_v16, 2147483647  ;;  %v1894_v28 = vmax.f32 %v849_v11, %v850_v2  ;;  %v1909_v62 = vld [vmem:[%s577_s14] sm:$0x3] }
  0x2f   : > { %1562 = vpow2.f32 %v681_v12  ;;  %v810_v21 = vrot.slane %v809_v20, 4  ;;  %v938_v31 = vmax.f32 %v936_v1, %v937_v24  ;;  %v895_v55 = vrot.slane %v894_v38, 4  ;;  %s1672_s14 = smov [#allocation2]  }
  0x30   : > { %1564 = vpow2.f32 %v756_v17  ;;  %v819_v23 = vsel %vm661_vm0, %v808_v18, 2147483647  ;;  %v854_v36 = vcombine.low %v1889_v22, %v1894_v28  ;;  %v947_v60 = vmax.f32 %v945_v40, %v946_v51  ;;  %s1594_s21 = sshll.u32 %s1672_s14, 4  ;;  %s1595_s21 = int_to_ptr.vmem [resolvable:$false] %s1594_s21 }
  0x31   : > { %vm811_vm5 = vcmp.lt.s32.totalorder %v809_v20, %v810_v21  ;;  %v820_v27 = vrot.slane %v819_v23, 4  ;;  %v939_v39 = vrot.slane %v938_v31, 2  ;;  %v1912_v63 = vsub.s32 1, %v1793_v3  ;;  %s1596_s22 = scalar_lea.vmem %s1595_s21, 1024  ;;  %p1597_p1 = scmp.lt.s32.totalorder %s2190_s24, %s1595_s21 }
  0x32   : > { %v812_v30 = vsel %vm811_vm5, %v809_v20, %v810_v21  ;;  %v856_v44 = vsub.f32 %v1822_v14, %v854_v36  ;;  %vm910_vm8 = vcmp.eq.f32.partialorder %v1822_v14, %v854_v36  ;;  %v1916_v14 = vsub.s32 %v1033_v33, %v1793_v3  ;;  %p1598_p2 = scmp.lt.s32.totalorder %s1596_s22, %s1590_s12 }
  0x33   : > { %v813_v35 = vrot.slane %v812_v30, 2  ;;  %vm821_vm6 = vcmp.lt.s32.totalorder %v819_v23, %v820_v27  ;;  %v940_v46 = vmax.f32 %v938_v31, %v939_v39  ;;  %v911_v5 = vsel %vm910_vm8, %v1868_v57, 3 }
  0x34   : > { %v822_v37 = vsel %vm821_vm6, %v819_v23, %v820_v27  ;;  %v857_v54 = vmul.f32 1.442695, %v856_v44  ;;  %vm657_vm10 = vcmp.gt.f32.partialorder %v1909_v62, 1.3862944  ;;  %vm830_vm11 = vcmp.ne.s32.totalorder %v1815_v8, 255  ;;  %p1599_p3 = por %p1598_p2, %p1597_p1 }
  0x35   : > { %vm814_vm7 = vcmp.lt.s32.totalorder %v812_v30, %v813_v35  ;;  %v823_v42 = vrot.slane %v822_v37, 2  ;;  %v941_v56 = vrot.slane %v940_v46, 1  ;;  %v913_v9 = vsel %vm837_vm1, %v911_v5, 2147483647  ;;  %vm1954_vm15 = vmand %vm657_vm10, %vm830_vm11 }
  0x36   : > { %v815_v45 = vsel %vm814_vm7, %v812_v30, %v813_v35  ;;  %1566 = vpow2.f32 %v857_v54  ;;  %v786_v10 = vrot.slane %v785_v41, 2  ;;  %v914_v11 = vrot.slane %v913_v9, 4  ;;  %p1600_p5 = pnand %p1599_p3, %p1593_p0 }
  0x37   : > { %vm824_vm9 = vcmp.lt.s32.totalorder %v822_v37, %v823_v42  ;;  %v816_v58 = vrot.slane %v815_v45, 1  ;;  %v1921_v12 = vmax.f32 %v940_v46, %v941_v56  ;;  %v948_v15 = vrot.slane %v947_v60, 1 }
  0x38   : > { %v825_v59 = vsel %vm824_vm9, %v822_v37, %v823_v42  ;;  %v722_v1 = vadd.f32 %v721_v53, %v720_v34  ;;  %v896_v17 = vadd.f32 %v895_v55, %v894_v38  ;;  %v980_v18 = vsel %vm890_vm4, %v1859_v50, 0.0 }
  0x39   : > { %v826_v7 = vrot.slane %v825_v59, 1  ;;  %vm1925_vm12 = vcmp.lt.s32.totalorder %v815_v45, %v816_v58  ;;  %v912_v2 = vcombine.high %v911_v5, %v911_v5  ;;  %vm915_vm13 = vcmp.lt.s32.totalorder %v913_v9, %v914_v11 }
  0x3a   : > { %v1937_v23 = vmax.f32 %v947_v60, %v948_v15  ;;  %v916_v27 = vsel %vm915_vm13, %v913_v9, %v914_v11  ;;  %v787_v30 = vadd.f32 %v786_v10, %v785_v41  ;;  %v982_v32 = vsel %vm837_vm1, %v980_v18, 0.0 }
  0x3b   : > { %vm827_vm14 = vcmp.lt.s32.totalorder %v825_v59, %v826_v7  ;;  %v818_v34 = vsel %vm1925_vm12, %v815_v45, %v816_v58  ;;  %v897_v35 = vrot.slane %v896_v17, 2  ;;  %v917_v36 = vrot.slane %v916_v27, 2 }
  0x3c   : > { %v1923_v16 = vpop.eup %1562  ;;  %v952_v31 = vcombine.low %v1921_v12, %v1937_v23  ;;  %v828_v38 = vsel %vm827_vm14, %v825_v59, %v826_v7  ;;  %v923_v39 = vsel %vm837_vm1, %v912_v2, 2147483647  ;;  %v713_v41 = vrot.slane %v1815_v8, %v1912_v63 }
  0x3d   : > { %v1933_v20 = vpop.eup %1564  ;;  %v686_v21 = vsel %vm661_vm0, %v1923_v16, 0.0  ;;  %v723_v44 = vrot.slane %v722_v1, 1  ;;  %v983_v46 = vrot.slane %v982_v32, 4  ;;  %v788_v53 = vrot.slane %v787_v30, 1 }
  0x3e   : > { %v687_v24 = vrot.slane %v686_v21, 4  ;;  %v761_v25 = vsel %vm661_vm0, %v1933_v20, 0.0  ;;  %v954_v40 = vsub.f32 %v1859_v50, %v952_v31  ;;  %vm1026_vm2 = vcmp.eq.s32.totalorder %v818_v34, %v1828_v19 }
  0x3f   : > { %v762_v29 = vrot.slane %v761_v25, 4  ;;  %vm1959_vm3 = vcmp.lt.s32.totalorder %v916_v27, %v917_v36  ;;  %v924_v58 = vrot.slane %v923_v39, 4  ;;  %vm1027_vm4 = vcmp.eq.s32.totalorder %v828_v38, %v713_v41 }
  0x40   : > { %v688_v33 = vadd.f32 %v687_v24, %v686_v21  ;;  %v955_v54 = vmul.f32 1.442695, %v954_v40  ;;  %v1963_v56 = vadd.f32 %v897_v35, %v896_v17  ;;  %v1670_v60 = vmov 0  }
  0x41   : > { %v763_v37 = vadd.f32 %v762_v29, %v761_v25  ;;  %v1028_v5 = vsel %vm1026_vm2, 1, %v1670_v60  ;;  %v1966_v10 = vadd.f32 %v723_v44, %v722_v1  ;;  %v1671_v11 = vmov 0.0  }
  0x42   : > { %v689_v42 = vrot.slane %v688_v33, 2  ;;  %1568 = vpow2.f32 %v955_v54  ;;  %v1971_v19 = vsel %vm1954_vm15, 1.0, %v1671_v11  ;;  %v1973_v15 = vadd.f32 %v983_v46, %v982_v32 }
  0x43   : > { %v764_v51 = vrot.slane %v763_v37, 2  ;;  %v1567_v7 = vpop.eup %1566  ;;  %v919_v18 = vsel %vm1959_vm3, %v916_v27, %v917_v36  ;;  %v1029_v21 = vsel %vm1027_vm4, 1, %v1670_v60  ;;  %vm925_vm5 = vcmp.lt.s32.totalorder %v923_v39, %v924_v58 }
  0x44   : > { %v690_v50 = vadd.f32 %v689_v42, %v688_v33  ;;  %v862_v17 = vsel %vm837_vm1, %v1567_v7, 0.0  ;;  %v1030_v1 = vcombine.low %v1028_v5, %v1029_v21  ;;  %v1979_v29 = vadd.f32 %v788_v53, %v787_v30 }
  0x45   : > { %v765_v59 = vadd.f32 %v764_v51, %v763_v37  ;;  %v863_v24 = vrot.slane %v862_v17, 4  ;;  %v899_v31 = vrot.slane %v1963_v56, 1  ;;  %v1012_v32 = vand.u32 2147483647, %v1909_v62 }
  0x46   : > { %v691_v9 = vrot.slane %v690_v50, 1  ;;  %v920_v34 = vrot.slane %v919_v18, 1  ;;  %v1037_v35 = vrot.slane %v1030_v1, %v1916_v14  ;;  %vm829_vm6 = vcmp.ge.s32.totalorder %v1815_v8, 0 }
  0x47   : > { %v766_v57 = vrot.slane %v765_v59, 1  ;;  %v864_v33 = vadd.f32 %v863_v24, %v862_v17  ;;  %v1985_v27 = vsel %vm925_vm5, %v923_v39, %v924_v58  ;;  %v684_v36 = vcombine.high %v1923_v16, %v1923_v16 }
  0x48   : > { %v692_v2 = vadd.f32 %v691_v9, %v690_v50  ;;  %vm715_vm7 = vcmp.eq.s32.totalorder %v1793_v3, %v713_v41  ;;  %v985_v37 = vrot.slane %v1973_v15, 2  ;;  %v759_v40 = vcombine.high %v1933_v20, %v1933_v20 }
  0x49   : > { %v767_v25 = vadd.f32 %v766_v57, %v765_v59  ;;  %v865_v30 = vrot.slane %v864_v33, 2  ;;  %v717_v38 = vsel %vm715_vm7, %v1805_v4, 0.0  ;;  %v1013_v42 = vsub.f32 0.0, %v1012_v32 }
  0x4a   : > { %1570 = vlog2.f32 %v692_v2  ;;  %v693_v44 = vsel %vm661_vm0, %v684_v36, 0.0  ;;  %v782_v46 = vsel %vm715_vm7, %v1811_v6, 0.0  ;;  %v860_v39 = vcombine.high %v1567_v7, %v1567_v7 }
  0x4b   : > { %1572 = vlog2.f32 %v767_v25  ;;  %v866_v51 = vadd.f32 %v865_v30, %v864_v33  ;;  %vm921_vm8 = vcmp.lt.s32.totalorder %v919_v18, %v920_v34  ;;  %v1044_v16 = vrot.slane %v1037_v35, %v1916_v14 }
  0x4c   : > { %v694_v53 = vrot.slane %v693_v44, 4  ;;  %v927_v41 = vrot.slane %v1985_v27, 2  ;;  %v725_v45 = vsel %vm661_vm0, %v717_v38, 0.0  ;;  %v768_v4 = vsel %vm661_vm0, %v759_v40, 0.0 }
  0x4d   : > { %v869_v54 = vsel %vm837_vm1, %v860_v39, 0.0  ;;  %v867_v20 = vrot.slane %v866_v51, 1  ;;  %v790_v55 = vsel %vm661_vm0, %v782_v46, 0.0  ;;  %v2004_v6 = vrot.slane %v1853_v47, %v1912_v63 }
  0x4e   : > { %v695_v50 = vadd.f32 %v694_v53, %v693_v44  ;;  %v2006_v58 = vsel %vm921_vm8, %v919_v18, %v920_v34  ;;  %v1014_v59 = vmul.f32 1.442695, %v1013_v42  ;;  %v769_v5 = vrot.slane %v768_v4, 4 }
  0x4f   : > { %v870_v7 = vrot.slane %v869_v54, 4  ;;  %v2008_v9 = vpop.eup %1568  ;;  %v868_v57 = vadd.f32 %v867_v20, %v866_v51  ;;  %vm2010_vm9 = vcmp.ne.s32.totalorder %v1044_v16, 0  ;;  %v726_v2 = vrot.slane %v725_v45, 4 }
  0x50   : > { %v696_v21 = vrot.slane %v695_v50, 2  ;;  %v960_v24 = vsel %vm837_vm1, %v2008_v9, 0.0  ;;  %v770_v1 = vadd.f32 %v769_v5, %v768_v4  ;;  %v791_v25 = vrot.slane %v790_v55, 4  ;;  %vm2026_vm12 = vmand %vm829_vm6, %vm2010_vm9 }
  0x51   : > { %v871_v32 = vadd.f32 %v870_v7, %v869_v54  ;;  %1574 = vlog2.f32 %v868_v57  ;;  %v961_v18 = vrot.slane %v960_v24, 4  ;;  %vm891_vm11 = vcmp.eq.s32.totalorder %v1793_v3, %v2004_v6 }
  0x52   : > { %v697_v33 = vadd.f32 %v696_v21, %v695_v50  ;;  %1576 = vpow2.f32 %v1014_v59  ;;  %v771_v34 = vrot.slane %v770_v1, 2  ;;  %v893_v36 = vsel %vm891_vm11, %v1832_v26, 0.0 }
  0x53   : > { %v872_v35 = vrot.slane %v871_v32, 2  ;;  %v962_v30 = vadd.f32 %v961_v18, %v960_v24  ;;  %v2032_v40 = vrot.slane %v1971_v19, %v1820_v13  ;;  %vm1204_vm13 = vcmask 1040384  }
  0x54   : > { %v698_v42 = vrot.slane %v697_v33, 1  ;;  %v901_v44 = vsel %vm837_vm1, %v893_v36, 0.0  ;;  %v727_v39 = vadd.f32 %v726_v2, %v725_v45  ;;  %v772_v26 = vadd.f32 %v771_v34, %v770_v1 }
  0x55   : > { %v873_v51 = vadd.f32 %v872_v35, %v871_v32  ;;  %v902_v16 = vrot.slane %v901_v44, 4  ;;  %v963_v54 = vrot.slane %v962_v30, 2  ;;  %vm999_vm14 = vcmp.ne.s32.totalorder %v1853_v47, 255 }
  0x56   : > { %v699_v20 = vadd.f32 %v698_v42, %v697_v33  ;;  %v792_v50 = vadd.f32 %v791_v25, %v790_v55  ;;  %v2039_v5 = vsel %vm2026_vm12, 1.0, %v1671_v11  ;;  %vm1207_vm15 = vcmask 1041408  }
  0x57   : > { %v1571_v46 = vpop.eup %1570  ;;  %v773_v7 = vrot.slane %v772_v26, 1  ;;  %v874_v57 = vrot.slane %v873_v51, 1  ;;  %v964_v17 = vadd.f32 %v963_v54, %v962_v30  ;;  %v903_v21 = vadd.f32 %v902_v16, %v901_v44 }
  0x58   : > { %v1573_v53 = vpop.eup %1572  ;;  %v701_v4 = vmul.f32 0.6931472, %v1571_v46  ;;  %1578 = vlog2.f32 %v699_v20  ;;  %v728_v24 = vrot.slane %v727_v39, 2  ;;  %v793_v18 = vrot.slane %v792_v50, 2 }
  0x59   : > { %v776_v59 = vmul.f32 0.6931472, %v1573_v53  ;;  %v774_v1 = vadd.f32 %v773_v7, %v772_v26  ;;  %v875_v32 = vadd.f32 %v874_v57, %v873_v51  ;;  %v965_v25 = vrot.slane %v964_v17, 1 }
  0x5a   : > { %v704_v45 = vadd.f32 %v701_v4, %v1851_v43  ;;  %vm928_vm2 = vcmp.lt.s32.totalorder %v1985_v27, %v927_v41  ;;  %v904_v35 = vrot.slane %v903_v21, 2  ;;  %v986_v36 = vadd.f32 %v985_v37, %v1973_v15 }
  0x5b   : > { %v779_v2 = vadd.f32 %v776_v59, %v1857_v49  ;;  %1580 = vlog2.f32 %v774_v1  ;;  %v929_v43 = vsel %vm928_vm2, %v1985_v27, %v927_v41  ;;  %v958_v49 = vcombine.high %v2008_v9, %v2008_v9 }
  0x5c   : > { %v732_v55 = vsub.f32 %v704_v45, %v1966_v10  ;;  %v966_v34 = vadd.f32 %v965_v25, %v964_v17  ;;  %1582 = vlog2.f32 %v875_v32  ;;  %v930_v10 = vrot.slane %v929_v43, 1 }
  0x5d   : > { %v797_v33 = vsub.f32 %v779_v2, %v1979_v29  ;;  %v2059_v29 = vsel %vm829_vm6, 1.0, %v1671_v11  ;;  %vm1064_vm3 = vcmp.eq.s32.totalorder %v2006_v58, %v1874_v61  ;;  %v967_v27 = vsel %vm837_vm1, %v958_v49, 0.0  ;;  %vm1000_vm6 = vmand %vm657_vm10, %vm999_vm14 }
  0x5e   : > { %1584 = vlog2.f32 %v966_v34  ;;  %v1108_v41 = vrot.slane %v2039_v5, %v1820_v13  ;;  %v729_v9 = vadd.f32 %v728_v24, %v727_v39  ;;  %vm931_vm4 = vcmp.lt.s32.totalorder %v929_v43, %v930_v10  ;;  %v1575_v30 = vpop.eup %1574 }
  0x5f   : > { %v1205_v38 = vsel %vm1204_vm13, %v732_v55, %v797_v33  ;;  %v932_v15 = vsel %vm931_vm4, %v929_v43, %v930_v10  ;;  %v968_v37 = vrot.slane %v967_v27, 4  ;;  %v981_v8 = vsel %vm891_vm11, %v1879_v0, 0.0  ;;  %v2071_v42 = vpop.eup %1576 }
  0x60   : > { %v1062_v61 = vmul.f32 %v2032_v40, %v797_v33  ;;  %v1066_v58 = vsel %vm1064_vm3, 1, %v1670_v60  ;;  %vm1214_vm5 = vcmask 1044480   ;;  %v794_v44 = vadd.f32 %v793_v18, %v792_v50 }
  0x61   : > { %v905_v46 = vadd.f32 %v904_v35, %v903_v21  ;;  %v987_v39 = vrot.slane %v986_v36, 1  ;;  %v1119_v26 = vrot.slane %v2059_v29, %v1820_v13  ;;  %v969_v3 = vadd.f32 %v968_v37, %v967_v27 }
  0x62   : > { %vm1065_vm7 = vcmp.eq.s32.totalorder %v932_v15, %v2004_v6  ;;  %v877_v0 = vmul.f32 0.6931472, %v1575_v30  ;;  %v1208_v51 = vsel %vm1207_vm15, %v1205_v38, %v1108_v41  ;;  %v989_v16 = vsel %vm837_vm1, %v981_v8, 0.0 }
  0x63   : > { %v1067_v53 = vsel %vm1065_vm7, 1, %v1670_v60  ;;  %v900_v4 = vadd.f32 %v899_v31, %v1963_v56  ;;  %vm1217_vm8 = vcmask 1045504   ;;  %v730_v54 = vrot.slane %v729_v9, 1 }
  0x64   : > { %v970_v20 = vrot.slane %v969_v3, 2  ;;  %v1068_v50 = vcombine.low %v1066_v58, %v1067_v53  ;;  %v2089_v59 = vsel %vm1000_vm6, 1.0, %v1671_v11  ;;  %v1128_v7 = vrot.slane %v1062_v61, 4 }
  0x65   : > { %v795_v6 = vrot.slane %v794_v44, 1  ;;  %v906_v57 = vrot.slane %v905_v46, 1  ;;  %v1579_v45 = vpop.eup %1578  ;;  %v1210_v17 = vsel %vm837_vm1, %v1208_v51, %v1119_v26  ;;  %v990_v2 = vrot.slane %v989_v16, 4  ;;  %v654_v26 = vld [vmem:[%s634_s13] sm:$0x3] }
  0x66   : > { %v971_v21 = vadd.f32 %v970_v20, %v969_v3  ;;  %v1075_v60 = vrot.slane %v1068_v50, %v1916_v14  ;;  %v880_v24 = vadd.f32 %v877_v0, %v1889_v22  ;;  %v988_v56 = vadd.f32 %v987_v39, %v986_v36 }
  0x67   : > { %vm998_vm10 = vcmp.ge.s32.totalorder %v1853_v47, 0  ;;  %v703_v31 = vmul.f32 0.6931472, %v1579_v45  ;;  %v2097_v1 = vrot.slane %v2089_v59, %v1820_v13  ;;  %vm1220_vm9 = vcmask 1046528  }
  0x68   : > { %v731_v32 = vadd.f32 %v730_v54, %v729_v9  ;;  %v972_v55 = vrot.slane %v971_v21, 1  ;;  %v1016_v25 = vadd.f32 1.0, %v2071_v42  ;;  %v1581_v18 = vpop.eup %1580  ;;  %v1212_v33 = vsel %vm661_vm0, %v1210_v17, %v1128_v7 }
  0x69   : > { %v705_v43 = vadd.f32 %v703_v31, %v1855_v48  ;;  %v796_v49 = vadd.f32 %v795_v6, %v794_v44  ;;  %v1082_v22 = vrot.slane %v1075_v60, %v1916_v14  ;;  %v1583_v34 = vpop.eup %1582  ;;  %v778_v35 = vmul.f32 0.6931472, %v1581_v18 }
  0x6a   : > { %v907_v10 = vadd.f32 %v906_v57, %v905_v46  ;;  %v973_v36 = vadd.f32 %v972_v55, %v971_v21  ;;  %v991_v27 = vadd.f32 %v990_v2, %v989_v16  ;;  %v908_v41 = vsub.f32 %v880_v24, %v900_v4 }
  0x6b   : > { %v879_v9 = vmul.f32 0.6931472, %v1583_v34  ;;  %v1059_v30 = vrot.slane %v1971_v19, %v1912_v63  ;;  %1586 = vlog2.f32 %v1016_v25  ;;  %v1585_v38 = vpop.eup %1584  ;;  %v1215_v48 = vsel %vm1214_vm5, %v1212_v33, %v2032_v40 }
  0x6c   : > { %v733_v15 = vsub.f32 %v705_v43, %v731_v32  ;;  %v780_v37 = vadd.f32 %v778_v35, %v1862_v52  ;;  %1588 = vlog2.f32 %v973_v36  ;;  %v975_v14 = vmul.f32 0.6931472, %v1585_v38 }
  0x6d   : > { %v1112_v8 = vrot.slane %v2039_v5, %v1912_v63  ;;  %v1123_v61 = vrot.slane %v2059_v29, %v1912_v63  ;;  %vm1083_vm11 = vcmp.ne.s32.totalorder %v1082_v22, 0  ;;  %v881_v40 = vadd.f32 %v879_v9, %v1894_v28 }
  0x6e   : > { %v798_v19 = vsub.f32 %v780_v37, %v796_v49  ;;  %v992_v58 = vrot.slane %v991_v27, 2  ;;  %vm1084_vm12 = vmand %vm998_vm10, %vm1083_vm11  ;;  %v2123_v52 = vsel %vm998_vm10, 1.0, %v1671_v11  ;;  %v978_v5 = vadd.f32 %v975_v14, %v1921_v12 }
  0x6f   : > { %v1218_v29 = vsel %vm1217_vm8, %v1215_v48, %v908_v41  ;;  %v1019_v44 = vmul.f32 -0.5, %v2071_v42  ;;  %v1483_v46 = vsel %vm1084_vm12, 1.0, %v1671_v11  ;;  %v1147_v47 = vrot.slane %v2123_v52, %v1820_v13 }
  0x70   : > { %v1063_v28 = vmul.f32 %v1059_v30, %v798_v19  ;;  %v1206_v39 = vsel %vm1204_vm13, %v733_v15, %v798_v19  ;;  %v1136_v3 = vrot.slane %v1483_v46, %v1820_v13  ;;  %v996_v0 = vsub.f32 %v978_v5, %v988_v56 }
  0x71   : > { %v1209_v12 = vsel %vm1207_vm15, %v1206_v39, %v1112_v8  ;;  %vm1003_vm14 = vcmp.eq.f32.partialorder %v654_v26, 1.0  ;;  %v1009_v51 = vmax.f32 %v1909_v62, 0.0  ;;  %v909_v16 = vsub.f32 %v881_v40, %v907_v10 }
  0x72   : > { %v993_v53 = vadd.f32 %v992_v58, %v991_v27  ;;  %v1129_v4 = vrot.slane %v1063_v28, 4  ;;  %v1211_v54 = vsel %vm837_vm1, %v1209_v12, %v1123_v61  ;;  %v1100_v20 = vmul.f32 %v2097_v1, %v996_v0 }
  0x73   : > { %v1221_v50 = vsel %vm1220_vm9, %v1218_v29, %v996_v0  ;;  %v1010_v7 = vmul.f32 %v654_v26, %v1909_v62  ;;  %v1020_v6 = vadd.f32 1.0, %v1019_v44  ;;  %v1022_v45 = vand.u32 2147483647, %v2071_v42 }
  0x74   : > { %v1213_v57 = vsel %vm661_vm0, %v1211_v54, %v1129_v4  ;;  %v1223_v17 = vsel %vm1204_vm13, %v1136_v3, %v1147_v47  ;;  %v1156_v21 = vrot.slane %v1100_v20, 6  ;;  %v1479_v60 = vsel %vm1003_vm14, 1.0, %v1671_v11  ;;  %1245 = vst [vmem:[%s2146_s19] sm:$0xff] %v1221_v50 }
  0x75   : > { %v1216_v2 = vsel %vm1214_vm5, %v1213_v57, %v1059_v30  ;;  %vm1006_vm2 = vcmp.eq.f32.partialorder %v654_v26, 0.0  ;;  %v994_v24 = vrot.slane %v993_v53, 1  ;;  %v1021_v56 = vmul.f32 %v2071_v42, %v1020_v6 }
  0x76   : > { %v1219_v62 = vsel %vm1217_vm8, %v1216_v2, %v909_v16  ;;  %v1225_v31 = vsel %vm1207_vm15, %v1223_v17, %v1156_v21  ;;  %v1480_v55 = vsel %vm1006_vm2, 1.0, %v1671_v11  ;;  %v1011_v25 = vsub.f32 %v1009_v51, %v1010_v7 }
  0x77   : > { %vm1023_vm3 = vcmp.lt.f32.partialorder %v1022_v45, 0.0004427343  ;;  %v1164_v18 = vrot.slane %v1479_v60, %v1820_v13  ;;  %v1227_v49 = vsel %vm837_vm1, %v1225_v31, %v2097_v1  ;;  %v995_v34 = vadd.f32 %v994_v24, %v993_v53 }
  0x78   : > { %v1587_v32 = vpop.eup %1586  ;;  %v1175_v10 = vrot.slane %v1480_v55, %v1820_v13  ;;  %v1097_v36 = vrot.slane %v2089_v59, %v1912_v63  ;;  %v1140_v41 = vrot.slane %v1483_v46, %v1912_v63  ;;  %v1151_v9 = vrot.slane %v2123_v52, %v1912_v63 }
  0x79   : > { %v1589_v33 = vpop.eup %1588  ;;  %v1018_v43 = vmul.f32 0.6931472, %v1587_v32  ;;  %v1229_v27 = vsel %vm661_vm0, %v1227_v49, %v1164_v18  ;;  %v1168_v19 = vrot.slane %v1479_v60, %v1912_v63  ;;  %v1179_v58 = vrot.slane %v1480_v55, %v1912_v63 }
  0x7a   : > { %v977_v22 = vmul.f32 0.6931472, %v1589_v33  ;;  %v1231_v48 = vsel %vm1214_vm5, %v1229_v27, %v1175_v10  ;;  %v1224_v14 = vsel %vm1204_vm13, %v1140_v41, %v1151_v9 }
  0x7b   : > { %v1024_v35 = vsel %vm1023_vm3, %v1021_v56, %v1018_v43 }
  0x7c   : > { %v979_v42 = vadd.f32 %v977_v22, %v1937_v23  ;;  %v1025_v11 = vadd.f32 %v1024_v35, %v1011_v25 }
  0x7e   : > { %v997_v1 = vsub.f32 %v979_v42, %v995_v34  ;;  %v1102_v30 = vmul.f32 %v1479_v60, %v1025_v11  ;;  %v1103_v38 = vmul.f32 %v1480_v55, %v1025_v11 }
  0x80   : > { %v1101_v15 = vmul.f32 %v1097_v36, %v997_v1  ;;  %v1222_v23 = vsel %vm1220_vm9, %v1219_v62, %v997_v1  ;;  %v1186_v59 = vrot.slane %v1102_v30, %v1820_v13  ;;  %v1197_v37 = vrot.slane %v1103_v38, %v1820_v13 }
  0x81   : > { %1246 = vst [vmem:[%s2146_s19 + $0x8] sm:$0xff] %v1222_v23  ;;  %v1190_v52 = vrot.slane %v1102_v30, %v1912_v63  ;;  %v1201_v13 = vrot.slane %v1103_v38, %v1912_v63 }
  0x82   : > { %v1157_v8 = vrot.slane %v1101_v15, 6  ;;  %v1233_v61 = vsel %vm1217_vm8, %v1231_v48, %v1186_v59 }
  0x83   : > { %v1235_v40 = vsel %vm1220_vm9, %v1233_v61, %v1197_v37 }
  0x84   : > { %v1226_v5 = vsel %vm1207_vm15, %v1224_v14, %v1157_v8  ;;  %1247 = vst [vmem:[%s2146_s19 + $0x10] sm:$0xff] %v1235_v40 }
  0x85   : > { %v1228_v29 = vsel %vm837_vm1, %v1226_v5, %v1097_v36 }
  0x86   : > { %v1230_v44 = vsel %vm661_vm0, %v1228_v29, %v1168_v19 }
  0x87   : > { %v1232_v46 = vsel %vm1214_vm5, %v1230_v44, %v1179_v58 }
  0x88   : > { %v1234_v28 = vsel %vm1217_vm8, %v1232_v46, %v1190_v52 }
  0x89   : > { %v1236_v39 = vsel %vm1220_vm9, %v1234_v28, %v1201_v13 }
  0x8a   : > { %1248 = vst [vmem:[%s2146_s19 + $0x18] sm:$0xff] %v1236_v39 }
  0x8b   : > { %1603 = shalt.err (!%p1600_p5)
}
  0x8c   : > { %s1604_s16 = scalar_lea.hbm %s2188_s20, 512  ;;  %s1608_s19 = scalar_lea.hbm %s2248_s8, 1024 }
  0x8d   : > { %p1605_p6 = scmp.ne.s32.totalorder %s2188_s20, %s1604_s16  ;;  %p1609_p10 = scmp.lt.s32.totalorder %s2188_s20, %s2248_s8 }
  0x8e   : > { %p1610_p11 = scmp.lt.s32.totalorder %s1608_s19, %s1604_s16 }
  0x8f   : > { %p1606_p7 = pnand %p1605_p6, %p1760_p4 }
  0x90   : > { %p1611_p12 = por %p1610_p11, %p1609_p10 }
  0x91   : > { %p1607_p9 = pneg %p1606_p7 }
  0x93   : > { %p1612_p13 = pnand %p1611_p12, %p1607_p9 }
  0x95   : > { %1615 = shalt.err (!%p1612_p13)
}
  0x96   : > { %s1673_s26 = smov 256   ;;  %s1674_s12 = smov 16  }
  0x97   : > { %1497 = dma.vmem_to_hbm [thread:$0]  (%p1760_p4), %s2190_s24, 512, %s2188_s20, %s2195_s30, %s1673_s26, %s1673_s26, %s1674_s12  }
  0x98 PF: > { %p1503_p0 = scmp.ge.s32.totalorder %s1666_s10, 2  ;;  %s1280_s14 = sand.u32 1, %s1646_s27  }
  0x99   : > { %s1281_s21 = scalar_lea.sflag [#allocation3], %s1280_s14 }
  0x9a   : > { %p1500_p1 = pnand %p1503_p0, %p1767_p8 }
  0x9c   : > { %p1501_p2 = pneg %p1500_p1 }
  0x9e   : > { %1641 = dma.done.wait (%p1501_p2), %s1281_s21, 512  }
  0x9f   : > { %1643 = vsyncadd (%p1501_p2), %s1281_s21, 4294966784  ;;  %s21_s10 = sadd.s32 1, %s1666_s10   ;;  %s2263_s15 = sld [smem:[#allocation5_spill]] }
  0xa0   : > { %p18_p3 = scmp.ge.s32.totalorder %s21_s10, 4   ;;  %s2264_s27 = smov %s1650_s28 }
  0xa1   : > { %s2265_s28 = smov %s1654_s29  ;;  %s2266_s29 = smov %s1773_s18 }
  0xa2   : > { %s2267_s30 = smov %s1662_s9  ;;  %20 = sbr.rel (!%p18_p3) target bundleno = 4 (0x4), region = 112 }
  0xa5   : > { %s2268_s9 = smov %s2263_s15 }
  0xa7   :  { %1286 = vsyncpa [#allocation3], 1 }
  0xa8   :  { %1288 = vsyncpa [#allocation3 + $0x1], 1 }

</bundles_post_ra>
